<compile_context>
chip_gen: v7x
topology: tpu7x:2x2x1
jax: 0.10.0
libtpu: 0.0.40
codegen_flags: <defaults>
</compile_context>

<pallas_src>
import functools

import jax
import jax.numpy as jnp
from jax import lax
from jax.experimental import pallas as pl
from jax.experimental.pallas import tpu as pltpu


# ----------------------------------------------------------------------------
# Kernel: masked-weight LSTM forward, whole sequence in one invocation.
# ----------------------------------------------------------------------------
def _weight_drop_lstm_kernel(x2d_ref, wih_t_ref, whh_t_ref, b_ref,
                             out_ref, hN_ref, cN_ref):
    """Single-invocation LSTM forward.

    x2d_ref:   (T*B, I)  bf16  -- inputs, time-major rows (row t*B + b == x[t, b])
    wih_t_ref: (I, 4H)   bf16  -- W_ih^T
    whh_t_ref: (H, 4H)   bf16  -- (mask * W_hh)^T  (weight-dropped recurrent weight)
    b_ref:     (1, 4H)   f32   -- b_ih + b_hh
    out_ref:   (T, B, H) f32   -- all hidden states
    hN_ref:    (B, H)    f32   -- final h
    cN_ref:    (B, H)    f32   -- final c
    """
    T, B, H = out_ref.shape

    # ---- Phase 1: hoisted input projection, one well-shaped MXU matmul ------
    # (T*B, I) @ (I, 4H) + bias, done once for all timesteps.
    gx = jnp.dot(x2d_ref[...], wih_t_ref[...],
                 preferred_element_type=jnp.float32) + b_ref[...]      # (T*B, 4H) f32

    # Recurrent weight loaded once; stays resident for the whole recurrence.
    whh_t = whh_t_ref[...]                                              # (H, 4H) bf16

    # ---- Phase 2: recurrence -- only h_{t-1} @ W_hh^T per step ---------------
    h = jnp.zeros((B, H), jnp.float32)
    c = jnp.zeros((B, H), jnp.float32)

    # T is small & static -> straight-line code with static (sublane-aligned) slices.
    # TODO(synk): for long sequences switch to lax.fori_loop(..., unroll=k) with gx
    # staged in a VMEM scratch to bound code size.
    for t in range(T):
        gates = gx[t * B:(t + 1) * B, :] + jnp.dot(
            h.astype(whh_t.dtype), whh_t,
            preferred_element_type=jnp.float32)                         # (B, 4H) f32

        # One EUP pass per nonlinearity over the full (B, 4H) vreg, then slice per
        # gate.  PyTorch gate order: [i, f, g, o].
        # NOTE: with H=32 the per-gate slices cut inside a 128-lane vreg (cheap XLU
        # rolls on an otherwise-idle unit); production shapes want H % 128 == 0.
        sig = jax.nn.sigmoid(gates)
        tnh = jnp.tanh(gates)
        i_g = sig[:, 0 * H:1 * H]
        f_g = sig[:, 1 * H:2 * H]
        g_g = tnh[:, 2 * H:3 * H]
        o_g = sig[:, 3 * H:4 * H]

        c = f_g * c + i_g * g_g
        h = o_g * jnp.tanh(c)
        out_ref[t] = h

    hN_ref[...] = h
    cN_ref[...] = c


def lstm_forward(x, w_ih, w_hh, b_ih, b_hh):
    """x: (T, B, I) f32; w_ih: (4H, I); w_hh: (4H, H) (already masked); biases (4H,)."""
    T, B, I = x.shape
    fourH, H = w_hh.shape

    # bf16 MXU operands (native on v5e/v6e/v7x), f32 accumulation inside the kernel.
    x2d = x.reshape(T * B, I).astype(jnp.bfloat16)
    wih_t = jnp.transpose(w_ih).astype(jnp.bfloat16)            # (I, 4H)
    whh_t = jnp.transpose(w_hh).astype(jnp.bfloat16)            # (H, 4H)
    b = (b_ih + b_hh).reshape(1, fourH).astype(jnp.float32)

    vmem = functools.partial(pl.BlockSpec, memory_space=pltpu.MemorySpace.VMEM)
    out, h_n, c_n = pl.pallas_call(
        _weight_drop_lstm_kernel,
        out_shape=(
            jax.ShapeDtypeStruct((T, B, H), jnp.float32),
            jax.ShapeDtypeStruct((B, H), jnp.float32),
            jax.ShapeDtypeStruct((B, H), jnp.float32),
        ),
        in_specs=[vmem(), vmem(), vmem(), vmem()],
        out_specs=(vmem(), vmem(), vmem()),
        compiler_params=pltpu.CompilerParams(
            vmem_limit_bytes=32 * 1024 * 1024),
    )(x2d, wih_t, whh_t, b)
    return out, (h_n, c_n)


# ----------------------------------------------------------------------------
# WeightDrop wrapper (JAX glue mirroring the PyTorch module's forward)
# ----------------------------------------------------------------------------
class WeightDropLSTM:
    """WeightDrop(nn.LSTM(I, H), ['weight_hh_l0'], dropout=p, variational=True)."""

    def __init__(self, input_size, hidden_size, dropout, key):
        self.input_size = input_size
        self.hidden_size = hidden_size
        self.dropout = dropout
        k = 1.0 / jnp.sqrt(hidden_size)
        ks = jax.random.split(key, 4)
        fourH = 4 * hidden_size
        # PyTorch LSTM init: U(-1/sqrt(H), 1/sqrt(H)).
        self.weight_ih = jax.random.uniform(ks[0], (fourH, input_size), jnp.float32, -k, k)
        self.weight_hh_raw = jax.random.uniform(ks[1], (fourH, hidden_size), jnp.float32, -k, k)
        self.bias_ih = jax.random.uniform(ks[2], (fourH,), jnp.float32, -k, k)
        self.bias_hh = jax.random.uniform(ks[3], (fourH,), jnp.float32, -k, k)

    def variational_row_mask(self, dropout_key):
        keep = 1.0 - self.dropout
        fourH = 4 * self.hidden_size
        return (jax.random.bernoulli(dropout_key, keep, (fourH, 1))
                .astype(jnp.float32) / keep)

    def __call__(self, x, dropout_key, training=True):
        if training and self.dropout > 0.0:
            # Variational dropout: one Bernoulli per ROW of weight_hh, shared across
            # columns (and therefore across all timesteps).  Plain jnp multiply so XLA
            # fuses it with the transpose — no extra kernel launch or HBM round-trip.
            w_hh = self.weight_hh_raw * self.variational_row_mask(dropout_key)
        else:
            # Eval / p == 0: skip the masking path entirely.
            w_hh = self.weight_hh_raw
        return lstm_forward(x, self.weight_ih, w_hh, self.bias_ih, self.bias_hh)


# ----------------------------------------------------------------------------
# Pure-JAX reference mirroring the kernel's numerics (bf16 matmul inputs,
# f32 accumulation/state) — silent correctness check.
# ----------------------------------------------------------------------------
def _lstm_ref(x, w_ih, w_hh, b_ih, b_hh):
    H = w_hh.shape[1]
    wih_t = w_ih.T.astype(jnp.bfloat16)
    whh_t = w_hh.T.astype(jnp.bfloat16)
    b = (b_ih + b_hh).astype(jnp.float32)

    def step(carry, x_t):
        h, c = carry
        gates = (jnp.dot(x_t.astype(jnp.bfloat16), wih_t,
                         preferred_element_type=jnp.float32)
                 + jnp.dot(h.astype(jnp.bfloat16), whh_t,
                           preferred_element_type=jnp.float32) + b)
        i = jax.nn.sigmoid(gates[:, 0 * H:1 * H])
        f = jax.nn.sigmoid(gates[:, 1 * H:2 * H])
        g = jnp.tanh(gates[:, 2 * H:3 * H])
        o = jax.nn.sigmoid(gates[:, 3 * H:4 * H])
        c = f * c + i * g
        h = o * jnp.tanh(c)
        return (h, c), h

    B = x.shape[1]
    init = (jnp.zeros((B, H), jnp.float32), jnp.zeros((B, H), jnp.float32))
    (h_n, c_n), out = lax.scan(step, init, x)
    return out, (h_n, c_n)


if __name__ == "__main__":
    key = jax.random.PRNGKey(0)
    k_param, k_x, k_drop = jax.random.split(key, 3)

    # 4H = 128 -> lane-aligned gate dim; B = 8 -> full sublane occupancy.
    T, B, I, H = 8, 8, 32, 32
    module = WeightDropLSTM(input_size=I, hidden_size=H, dropout=0.5, key=k_param)

    x = jax.random.normal(k_x, (T, B, I), jnp.float32)

    out, (h_n, c_n) = module(x, k_drop, training=True)
    jax.block_until_ready(out)
    jax.block_until_ready(h_n)
    jax.block_until_ready(c_n)

    # Silent numerical check against a pure-JAX reference using the same mask.
    w_hh_masked = module.weight_hh_raw * module.variational_row_mask(k_drop)
    out_ref, (h_ref, c_ref) = _lstm_ref(x, module.weight_ih, w_hh_masked,
                                        module.bias_ih, module.bias_hh)
    assert jnp.allclose(out, out_ref, atol=2e-3, rtol=2e-3)
    assert jnp.allclose(h_n, h_ref, atol=2e-3, rtol=2e-3)
    assert jnp.allclose(c_n, c_ref, atol=2e-3, rtol=2e-3)

    print("KERNEL_OK")
</pallas_src>

<mosaic_0001>
module attributes {stable_mosaic.version = 11 : i64} {
  func.func @_weight_drop_lstm_kernel(%arg0: memref<64x32xbf16, #tpu.memory_space<vmem>>, %arg1: memref<32x128xbf16, #tpu.memory_space<vmem>>, %arg2: memref<32x128xbf16, #tpu.memory_space<vmem>>, %arg3: memref<1x128xf32, #tpu.memory_space<vmem>>, %arg4: memref<8x8x32xf32, #tpu.memory_space<vmem>>, %arg5: memref<8x32xf32, #tpu.memory_space<vmem>>, %arg6: memref<8x32xf32, #tpu.memory_space<vmem>>) attributes {dimension_semantics = [], scalar_prefetch = 0 : i64, scratch_operands = 0 : i64, tpu.core_type = #tpu.core_type<tc>} {
    %c0 = arith.constant 0 : index
    %c0_0 = arith.constant 0 : index
    %0 = vector.load %arg0[%c0, %c0_0] : memref<64x32xbf16, #tpu.memory_space<vmem>>, vector<64x32xbf16>
    %c0_1 = arith.constant 0 : index
    %c0_2 = arith.constant 0 : index
    %1 = vector.load %arg1[%c0_1, %c0_2] : memref<32x128xbf16, #tpu.memory_space<vmem>>, vector<32x128xbf16>
    %cst = arith.constant dense<0.000000e+00> : vector<64x128xf32>
    %2 = tpu.matmul %0, %1, %cst {dimension_numbers = #tpu.dot_dimension_numbers<[1], [0], [0], [1], [0, 0, 1, 1], [], []>} : vector<64x32xbf16>, vector<32x128xbf16>, vector<64x128xf32> -> vector<64x128xf32>
    %c0_3 = arith.constant 0 : index
    %c0_4 = arith.constant 0 : index
    %3 = vector.load %arg3[%c0_3, %c0_4] : memref<1x128xf32, #tpu.memory_space<vmem>>, vector<1x128xf32>
    %4 = vector.broadcast %3 : vector<1x128xf32> to vector<64x128xf32>
    %5 = arith.addf %2, %4 : vector<64x128xf32>
    %c0_5 = arith.constant 0 : index
    %c0_6 = arith.constant 0 : index
    %6 = vector.load %arg2[%c0_5, %c0_6] : memref<32x128xbf16, #tpu.memory_space<vmem>>, vector<32x128xbf16>
    %cst_7 = arith.constant 0.000000e+00 : f32
    %7 = vector.broadcast %cst_7 : f32 to vector<8x32xf32>
    %cst_8 = arith.constant 0.000000e+00 : f32
    %8 = vector.broadcast %cst_8 : f32 to vector<8x32xf32>
    %9 = vector.extract_strided_slice %5 {offsets = [0, 0], sizes = [8, 128], strides = [1, 1]} : vector<64x128xf32> to vector<8x128xf32>
    %10 = arith.truncf %7 : vector<8x32xf32> to vector<8x32xbf16>
    %cst_9 = arith.constant dense<0.000000e+00> : vector<8x128xf32>
    %11 = tpu.matmul %10, %6, %cst_9 {dimension_numbers = #tpu.dot_dimension_numbers<[1], [0], [0], [1], [0, 0, 1, 1], [], []>} : vector<8x32xbf16>, vector<32x128xbf16>, vector<8x128xf32> -> vector<8x128xf32>
    %12 = arith.addf %9, %11 : vector<8x128xf32>
    %13 = arith.negf %12 : vector<8x128xf32>
    %14 = math.exp %13 : vector<8x128xf32>
    %cst_10 = arith.constant 1.000000e+00 : f32
    %15 = vector.broadcast %cst_10 : f32 to vector<8x128xf32>
    %16 = arith.addf %15, %14 : vector<8x128xf32>
    %17 = arith.divf %15, %16 : vector<8x128xf32>
    %18 = math.tanh %12 : vector<8x128xf32>
    %19 = vector.extract_strided_slice %17 {offsets = [0, 0], sizes = [8, 32], strides = [1, 1]} : vector<8x128xf32> to vector<8x32xf32>
    %20 = vector.extract_strided_slice %17 {offsets = [0, 32], sizes = [8, 32], strides = [1, 1]} : vector<8x128xf32> to vector<8x32xf32>
    %21 = vector.extract_strided_slice %18 {offsets = [0, 64], sizes = [8, 32], strides = [1, 1]} : vector<8x128xf32> to vector<8x32xf32>
    %22 = vector.extract_strided_slice %17 {offsets = [0, 96], sizes = [8, 32], strides = [1, 1]} : vector<8x128xf32> to vector<8x32xf32>
    %23 = arith.mulf %20, %8 : vector<8x32xf32>
    %24 = arith.mulf %19, %21 : vector<8x32xf32>
    %25 = arith.addf %23, %24 : vector<8x32xf32>
    %26 = math.tanh %25 : vector<8x32xf32>
    %27 = arith.mulf %22, %26 : vector<8x32xf32>
    %c0_11 = arith.constant 0 : index
    %c0_12 = arith.constant 0 : index
    %c0_13 = arith.constant 0 : index
    %28 = vector.load %arg4[%c0_11, %c0_12, %c0_13] : memref<8x8x32xf32, #tpu.memory_space<vmem>>, vector<1x8x32xf32>
    %29 = vector.shape_cast %28 : vector<1x8x32xf32> to vector<8x32xf32>
    %30 = vector.shape_cast %27 : vector<8x32xf32> to vector<1x8x32xf32>
    tpu.vector_store %arg4[%c0_11, %c0_12, %c0_13], %30 {strides = array<i32>} : memref<8x8x32xf32, #tpu.memory_space<vmem>>, vector<1x8x32xf32>,
    %31 = vector.extract_strided_slice %5 {offsets = [8, 0], sizes = [8, 128], strides = [1, 1]} : vector<64x128xf32> to vector<8x128xf32>
    %32 = arith.truncf %27 : vector<8x32xf32> to vector<8x32xbf16>
    %cst_14 = arith.constant dense<0.000000e+00> : vector<8x128xf32>
    %33 = tpu.matmul %32, %6, %cst_14 {dimension_numbers = #tpu.dot_dimension_numbers<[1], [0], [0], [1], [0, 0, 1, 1], [], []>} : vector<8x32xbf16>, vector<32x128xbf16>, vector<8x128xf32> -> vector<8x128xf32>
    %34 = arith.addf %31, %33 : vector<8x128xf32>
    %35 = arith.negf %34 : vector<8x128xf32>
    %36 = math.exp %35 : vector<8x128xf32>
    %cst_15 = arith.constant 1.000000e+00 : f32
    %37 = vector.broadcast %cst_15 : f32 to vector<8x128xf32>
    %38 = arith.addf %37, %36 : vector<8x128xf32>
    %39 = arith.divf %37, %38 : vector<8x128xf32>
    %40 = math.tanh %34 : vector<8x128xf32>
    %41 = vector.extract_strided_slice %39 {offsets = [0, 0], sizes = [8, 32], strides = [1, 1]} : vector<8x128xf32> to vector<8x32xf32>
    %42 = vector.extract_strided_slice %39 {offsets = [0, 32], sizes = [8, 32], strides = [1, 1]} : vector<8x128xf32> to vector<8x32xf32>
    %43 = vector.extract_strided_slice %40 {offsets = [0, 64], sizes = [8, 32], strides = [1, 1]} : vector<8x128xf32> to vector<8x32xf32>
    %44 = vector.extract_strided_slice %39 {offsets = [0, 96], sizes = [8, 32], strides = [1, 1]} : vector<8x128xf32> to vector<8x32xf32>
    %45 = arith.mulf %42, %25 : vector<8x32xf32>
    %46 = arith.mulf %41, %43 : vector<8x32xf32>
    %47 = arith.addf %45, %46 : vector<8x32xf32>
    %48 = math.tanh %47 : vector<8x32xf32>
    %49 = arith.mulf %44, %48 : vector<8x32xf32>
    %c1 = arith.constant 1 : index
    %c0_16 = arith.constant 0 : index
    %c0_17 = arith.constant 0 : index
    %50 = vector.load %arg4[%c1, %c0_16, %c0_17] : memref<8x8x32xf32, #tpu.memory_space<vmem>>, vector<1x8x32xf32>
    %51 = vector.shape_cast %50 : vector<1x8x32xf32> to vector<8x32xf32>
    %52 = vector.shape_cast %49 : vector<8x32xf32> to vector<1x8x32xf32>
    tpu.vector_store %arg4[%c1, %c0_16, %c0_17], %52 {strides = array<i32>} : memref<8x8x32xf32, #tpu.memory_space<vmem>>, vector<1x8x32xf32>,
    %53 = vector.extract_strided_slice %5 {offsets = [16, 0], sizes = [8, 128], strides = [1, 1]} : vector<64x128xf32> to vector<8x128xf32>
    %54 = arith.truncf %49 : vector<8x32xf32> to vector<8x32xbf16>
    %cst_18 = arith.constant dense<0.000000e+00> : vector<8x128xf32>
    %55 = tpu.matmul %54, %6, %cst_18 {dimension_numbers = #tpu.dot_dimension_numbers<[1], [0], [0], [1], [0, 0, 1, 1], [], []>} : vector<8x32xbf16>, vector<32x128xbf16>, vector<8x128xf32> -> vector<8x128xf32>
    %56 = arith.addf %53, %55 : vector<8x128xf32>
    %57 = arith.negf %56 : vector<8x128xf32>
    %58 = math.exp %57 : vector<8x128xf32>
    %cst_19 = arith.constant 1.000000e+00 : f32
    %59 = vector.broadcast %cst_19 : f32 to vector<8x128xf32>
    %60 = arith.addf %59, %58 : vector<8x128xf32>
    %61 = arith.divf %59, %60 : vector<8x128xf32>
    %62 = math.tanh %56 : vector<8x128xf32>
    %63 = vector.extract_strided_slice %61 {offsets = [0, 0], sizes = [8, 32], strides = [1, 1]} : vector<8x128xf32> to vector<8x32xf32>
    %64 = vector.extract_strided_slice %61 {offsets = [0, 32], sizes = [8, 32], strides = [1, 1]} : vector<8x128xf32> to vector<8x32xf32>
    %65 = vector.extract_strided_slice %62 {offsets = [0, 64], sizes = [8, 32], strides = [1, 1]} : vector<8x128xf32> to vector<8x32xf32>
    %66 = vector.extract_strided_slice %61 {offsets = [0, 96], sizes = [8, 32], strides = [1, 1]} : vector<8x128xf32> to vector<8x32xf32>
    %67 = arith.mulf %64, %47 : vector<8x32xf32>
    %68 = arith.mulf %63, %65 : vector<8x32xf32>
    %69 = arith.addf %67, %68 : vector<8x32xf32>
    %70 = math.tanh %69 : vector<8x32xf32>
    %71 = arith.mulf %66, %70 : vector<8x32xf32>
    %c2 = arith.constant 2 : index
    %c0_20 = arith.constant 0 : index
    %c0_21 = arith.constant 0 : index
    %72 = vector.load %arg4[%c2, %c0_20, %c0_21] : memref<8x8x32xf32, #tpu.memory_space<vmem>>, vector<1x8x32xf32>
    %73 = vector.shape_cast %72 : vector<1x8x32xf32> to vector<8x32xf32>
    %74 = vector.shape_cast %71 : vector<8x32xf32> to vector<1x8x32xf32>
    tpu.vector_store %arg4[%c2, %c0_20, %c0_21], %74 {strides = array<i32>} : memref<8x8x32xf32, #tpu.memory_space<vmem>>, vector<1x8x32xf32>,
    %75 = vector.extract_strided_slice %5 {offsets = [24, 0], sizes = [8, 128], strides = [1, 1]} : vector<64x128xf32> to vector<8x128xf32>
    %76 = arith.truncf %71 : vector<8x32xf32> to vector<8x32xbf16>
    %cst_22 = arith.constant dense<0.000000e+00> : vector<8x128xf32>
    %77 = tpu.matmul %76, %6, %cst_22 {dimension_numbers = #tpu.dot_dimension_numbers<[1], [0], [0], [1], [0, 0, 1, 1], [], []>} : vector<8x32xbf16>, vector<32x128xbf16>, vector<8x128xf32> -> vector<8x128xf32>
    %78 = arith.addf %75, %77 : vector<8x128xf32>
    %79 = arith.negf %78 : vector<8x128xf32>
    %80 = math.exp %79 : vector<8x128xf32>
    %cst_23 = arith.constant 1.000000e+00 : f32
    %81 = vector.broadcast %cst_23 : f32 to vector<8x128xf32>
    %82 = arith.addf %81, %80 : vector<8x128xf32>
    %83 = arith.divf %81, %82 : vector<8x128xf32>
    %84 = math.tanh %78 : vector<8x128xf32>
    %85 = vector.extract_strided_slice %83 {offsets = [0, 0], sizes = [8, 32], strides = [1, 1]} : vector<8x128xf32> to vector<8x32xf32>
    %86 = vector.extract_strided_slice %83 {offsets = [0, 32], sizes = [8, 32], strides = [1, 1]} : vector<8x128xf32> to vector<8x32xf32>
    %87 = vector.extract_strided_slice %84 {offsets = [0, 64], sizes = [8, 32], strides = [1, 1]} : vector<8x128xf32> to vector<8x32xf32>
    %88 = vector.extract_strided_slice %83 {offsets = [0, 96], sizes = [8, 32], strides = [1, 1]} : vector<8x128xf32> to vector<8x32xf32>
    %89 = arith.mulf %86, %69 : vector<8x32xf32>
    %90 = arith.mulf %85, %87 : vector<8x32xf32>
    %91 = arith.addf %89, %90 : vector<8x32xf32>
    %92 = math.tanh %91 : vector<8x32xf32>
    %93 = arith.mulf %88, %92 : vector<8x32xf32>
    %c3 = arith.constant 3 : index
    %c0_24 = arith.constant 0 : index
    %c0_25 = arith.constant 0 : index
    %94 = vector.load %arg4[%c3, %c0_24, %c0_25] : memref<8x8x32xf32, #tpu.memory_space<vmem>>, vector<1x8x32xf32>
    %95 = vector.shape_cast %94 : vector<1x8x32xf32> to vector<8x32xf32>
    %96 = vector.shape_cast %93 : vector<8x32xf32> to vector<1x8x32xf32>
    tpu.vector_store %arg4[%c3, %c0_24, %c0_25], %96 {strides = array<i32>} : memref<8x8x32xf32, #tpu.memory_space<vmem>>, vector<1x8x32xf32>,
    %97 = vector.extract_strided_slice %5 {offsets = [32, 0], sizes = [8, 128], strides = [1, 1]} : vector<64x128xf32> to vector<8x128xf32>
    %98 = arith.truncf %93 : vector<8x32xf32> to vector<8x32xbf16>
    %cst_26 = arith.constant dense<0.000000e+00> : vector<8x128xf32>
    %99 = tpu.matmul %98, %6, %cst_26 {dimension_numbers = #tpu.dot_dimension_numbers<[1], [0], [0], [1], [0, 0, 1, 1], [], []>} : vector<8x32xbf16>, vector<32x128xbf16>, vector<8x128xf32> -> vector<8x128xf32>
    %100 = arith.addf %97, %99 : vector<8x128xf32>
    %101 = arith.negf %100 : vector<8x128xf32>
    %102 = math.exp %101 : vector<8x128xf32>
    %cst_27 = arith.constant 1.000000e+00 : f32
    %103 = vector.broadcast %cst_27 : f32 to vector<8x128xf32>
    %104 = arith.addf %103, %102 : vector<8x128xf32>
    %105 = arith.divf %103, %104 : vector<8x128xf32>
    %106 = math.tanh %100 : vector<8x128xf32>
    %107 = vector.extract_strided_slice %105 {offsets = [0, 0], sizes = [8, 32], strides = [1, 1]} : vector<8x128xf32> to vector<8x32xf32>
    %108 = vector.extract_strided_slice %105 {offsets = [0, 32], sizes = [8, 32], strides = [1, 1]} : vector<8x128xf32> to vector<8x32xf32>
    %109 = vector.extract_strided_slice %106 {offsets = [0, 64], sizes = [8, 32], strides = [1, 1]} : vector<8x128xf32> to vector<8x32xf32>
    %110 = vector.extract_strided_slice %105 {offsets = [0, 96], sizes = [8, 32], strides = [1, 1]} : vector<8x128xf32> to vector<8x32xf32>
    %111 = arith.mulf %108, %91 : vector<8x32xf32>
    %112 = arith.mulf %107, %109 : vector<8x32xf32>
    %113 = arith.addf %111, %112 : vector<8x32xf32>
    %114 = math.tanh %113 : vector<8x32xf32>
    %115 = arith.mulf %110, %114 : vector<8x32xf32>
    %c4 = arith.constant 4 : index
    %c0_28 = arith.constant 0 : index
    %c0_29 = arith.constant 0 : index
    %116 = vector.load %arg4[%c4, %c0_28, %c0_29] : memref<8x8x32xf32, #tpu.memory_space<vmem>>, vector<1x8x32xf32>
    %117 = vector.shape_cast %116 : vector<1x8x32xf32> to vector<8x32xf32>
    %118 = vector.shape_cast %115 : vector<8x32xf32> to vector<1x8x32xf32>
    tpu.vector_store %arg4[%c4, %c0_28, %c0_29], %118 {strides = array<i32>} : memref<8x8x32xf32, #tpu.memory_space<vmem>>, vector<1x8x32xf32>,
    %119 = vector.extract_strided_slice %5 {offsets = [40, 0], sizes = [8, 128], strides = [1, 1]} : vector<64x128xf32> to vector<8x128xf32>
    %120 = arith.truncf %115 : vector<8x32xf32> to vector<8x32xbf16>
    %cst_30 = arith.constant dense<0.000000e+00> : vector<8x128xf32>
    %121 = tpu.matmul %120, %6, %cst_30 {dimension_numbers = #tpu.dot_dimension_numbers<[1], [0], [0], [1], [0, 0, 1, 1], [], []>} : vector<8x32xbf16>, vector<32x128xbf16>, vector<8x128xf32> -> vector<8x128xf32>
    %122 = arith.addf %119, %121 : vector<8x128xf32>
    %123 = arith.negf %122 : vector<8x128xf32>
    %124 = math.exp %123 : vector<8x128xf32>
    %cst_31 = arith.constant 1.000000e+00 : f32
    %125 = vector.broadcast %cst_31 : f32 to vector<8x128xf32>
    %126 = arith.addf %125, %124 : vector<8x128xf32>
    %127 = arith.divf %125, %126 : vector<8x128xf32>
    %128 = math.tanh %122 : vector<8x128xf32>
    %129 = vector.extract_strided_slice %127 {offsets = [0, 0], sizes = [8, 32], strides = [1, 1]} : vector<8x128xf32> to vector<8x32xf32>
    %130 = vector.extract_strided_slice %127 {offsets = [0, 32], sizes = [8, 32], strides = [1, 1]} : vector<8x128xf32> to vector<8x32xf32>
    %131 = vector.extract_strided_slice %128 {offsets = [0, 64], sizes = [8, 32], strides = [1, 1]} : vector<8x128xf32> to vector<8x32xf32>
    %132 = vector.extract_strided_slice %127 {offsets = [0, 96], sizes = [8, 32], strides = [1, 1]} : vector<8x128xf32> to vector<8x32xf32>
    %133 = arith.mulf %130, %113 : vector<8x32xf32>
    %134 = arith.mulf %129, %131 : vector<8x32xf32>
    %135 = arith.addf %133, %134 : vector<8x32xf32>
    %136 = math.tanh %135 : vector<8x32xf32>
    %137 = arith.mulf %132, %136 : vector<8x32xf32>
    %c5 = arith.constant 5 : index
    %c0_32 = arith.constant 0 : index
    %c0_33 = arith.constant 0 : index
    %138 = vector.load %arg4[%c5, %c0_32, %c0_33] : memref<8x8x32xf32, #tpu.memory_space<vmem>>, vector<1x8x32xf32>
    %139 = vector.shape_cast %138 : vector<1x8x32xf32> to vector<8x32xf32>
    %140 = vector.shape_cast %137 : vector<8x32xf32> to vector<1x8x32xf32>
    tpu.vector_store %arg4[%c5, %c0_32, %c0_33], %140 {strides = array<i32>} : memref<8x8x32xf32, #tpu.memory_space<vmem>>, vector<1x8x32xf32>,
    %141 = vector.extract_strided_slice %5 {offsets = [48, 0], sizes = [8, 128], strides = [1, 1]} : vector<64x128xf32> to vector<8x128xf32>
    %142 = arith.truncf %137 : vector<8x32xf32> to vector<8x32xbf16>
    %cst_34 = arith.constant dense<0.000000e+00> : vector<8x128xf32>
    %143 = tpu.matmul %142, %6, %cst_34 {dimension_numbers = #tpu.dot_dimension_numbers<[1], [0], [0], [1], [0, 0, 1, 1], [], []>} : vector<8x32xbf16>, vector<32x128xbf16>, vector<8x128xf32> -> vector<8x128xf32>
    %144 = arith.addf %141, %143 : vector<8x128xf32>
    %145 = arith.negf %144 : vector<8x128xf32>
    %146 = math.exp %145 : vector<8x128xf32>
    %cst_35 = arith.constant 1.000000e+00 : f32
    %147 = vector.broadcast %cst_35 : f32 to vector<8x128xf32>
    %148 = arith.addf %147, %146 : vector<8x128xf32>
    %149 = arith.divf %147, %148 : vector<8x128xf32>
    %150 = math.tanh %144 : vector<8x128xf32>
    %151 = vector.extract_strided_slice %149 {offsets = [0, 0], sizes = [8, 32], strides = [1, 1]} : vector<8x128xf32> to vector<8x32xf32>
    %152 = vector.extract_strided_slice %149 {offsets = [0, 32], sizes = [8, 32], strides = [1, 1]} : vector<8x128xf32> to vector<8x32xf32>
    %153 = vector.extract_strided_slice %150 {offsets = [0, 64], sizes = [8, 32], strides = [1, 1]} : vector<8x128xf32> to vector<8x32xf32>
    %154 = vector.extract_strided_slice %149 {offsets = [0, 96], sizes = [8, 32], strides = [1, 1]} : vector<8x128xf32> to vector<8x32xf32>
    %155 = arith.mulf %152, %135 : vector<8x32xf32>
    %156 = arith.mulf %151, %153 : vector<8x32xf32>
    %157 = arith.addf %155, %156 : vector<8x32xf32>
    %158 = math.tanh %157 : vector<8x32xf32>
    %159 = arith.mulf %154, %158 : vector<8x32xf32>
    %c6 = arith.constant 6 : index
    %c0_36 = arith.constant 0 : index
    %c0_37 = arith.constant 0 : index
    %160 = vector.load %arg4[%c6, %c0_36, %c0_37] : memref<8x8x32xf32, #tpu.memory_space<vmem>>, vector<1x8x32xf32>
    %161 = vector.shape_cast %160 : vector<1x8x32xf32> to vector<8x32xf32>
    %162 = vector.shape_cast %159 : vector<8x32xf32> to vector<1x8x32xf32>
    tpu.vector_store %arg4[%c6, %c0_36, %c0_37], %162 {strides = array<i32>} : memref<8x8x32xf32, #tpu.memory_space<vmem>>, vector<1x8x32xf32>,
    %163 = vector.extract_strided_slice %5 {offsets = [56, 0], sizes = [8, 128], strides = [1, 1]} : vector<64x128xf32> to vector<8x128xf32>
    %164 = arith.truncf %159 : vector<8x32xf32> to vector<8x32xbf16>
    %cst_38 = arith.constant dense<0.000000e+00> : vector<8x128xf32>
    %165 = tpu.matmul %164, %6, %cst_38 {dimension_numbers = #tpu.dot_dimension_numbers<[1], [0], [0], [1], [0, 0, 1, 1], [], []>} : vector<8x32xbf16>, vector<32x128xbf16>, vector<8x128xf32> -> vector<8x128xf32>
    %166 = arith.addf %163, %165 : vector<8x128xf32>
    %167 = arith.negf %166 : vector<8x128xf32>
    %168 = math.exp %167 : vector<8x128xf32>
    %cst_39 = arith.constant 1.000000e+00 : f32
    %169 = vector.broadcast %cst_39 : f32 to vector<8x128xf32>
    %170 = arith.addf %169, %168 : vector<8x128xf32>
    %171 = arith.divf %169, %170 : vector<8x128xf32>
    %172 = math.tanh %166 : vector<8x128xf32>
    %173 = vector.extract_strided_slice %171 {offsets = [0, 0], sizes = [8, 32], strides = [1, 1]} : vector<8x128xf32> to vector<8x32xf32>
    %174 = vector.extract_strided_slice %171 {offsets = [0, 32], sizes = [8, 32], strides = [1, 1]} : vector<8x128xf32> to vector<8x32xf32>
    %175 = vector.extract_strided_slice %172 {offsets = [0, 64], sizes = [8, 32], strides = [1, 1]} : vector<8x128xf32> to vector<8x32xf32>
    %176 = vector.extract_strided_slice %171 {offsets = [0, 96], sizes = [8, 32], strides = [1, 1]} : vector<8x128xf32> to vector<8x32xf32>
    %177 = arith.mulf %174, %157 : vector<8x32xf32>
    %178 = arith.mulf %173, %175 : vector<8x32xf32>
    %179 = arith.addf %177, %178 : vector<8x32xf32>
    %180 = math.tanh %179 : vector<8x32xf32>
    %181 = arith.mulf %176, %180 : vector<8x32xf32>
    %c7 = arith.constant 7 : index
    %c0_40 = arith.constant 0 : index
    %c0_41 = arith.constant 0 : index
    %182 = vector.load %arg4[%c7, %c0_40, %c0_41] : memref<8x8x32xf32, #tpu.memory_space<vmem>>, vector<1x8x32xf32>
    %183 = vector.shape_cast %182 : vector<1x8x32xf32> to vector<8x32xf32>
    %184 = vector.shape_cast %181 : vector<8x32xf32> to vector<1x8x32xf32>
    tpu.vector_store %arg4[%c7, %c0_40, %c0_41], %184 {strides = array<i32>} : memref<8x8x32xf32, #tpu.memory_space<vmem>>, vector<1x8x32xf32>,
    %c0_42 = arith.constant 0 : index
    %c0_43 = arith.constant 0 : index
    %185 = vector.load %arg5[%c0_42, %c0_43] : memref<8x32xf32, #tpu.memory_space<vmem>>, vector<8x32xf32>
    tpu.vector_store %arg5[%c0_42, %c0_43], %181 {strides = array<i32>} : memref<8x32xf32, #tpu.memory_space<vmem>>, vector<8x32xf32>,
    %c0_44 = arith.constant 0 : index
    %c0_45 = arith.constant 0 : index
    %186 = vector.load %arg6[%c0_44, %c0_45] : memref<8x32xf32, #tpu.memory_space<vmem>>, vector<8x32xf32>
    tpu.vector_store %arg6[%c0_44, %c0_45], %179 {strides = array<i32>} : memref<8x32xf32, #tpu.memory_space<vmem>>, vector<8x32xf32>,
    return
  }
}

</mosaic_0001>

<bundles_post_ra>
// kernel: tpu_custom_call.1
= control target key start
LH: loop header
LB: loop body
LE: loop exit
PB: predicated region body
PF: predicated region fallthrough
CT: control target
= control target key end

     0   :  { %12 = vsyncpa [#allocation3], 0  ;;  %v1123_v1 = vmov 0.0   ;;  %vm74_vm0 = vcmask 261120   ;;  %vm1124_vm1 = vmmov 0   ;;  %s1411_s0 = inlined_call_operand.vmem [shape: bf16[64,32], index: 0, kind: input, shape index: {}]   ;;  %s1412_s1 = inlined_call_operand.vmem [shape: bf16[32,128], index: 1, kind: input, shape index: {}]   ;;  %s1413_s2 = inlined_call_operand.vmem [shape: bf16[32,128], index: 2, kind: input, shape index: {}]   ;;  %s1414_s3 = inlined_call_operand.vmem [shape: f32[1,128], index: 3, kind: input, shape index: {}]   ;;  %s1415_s4 = inlined_call_operand.hbm [shape: f32[8,8,32], index: 4, kind: output, shape index: {0}]   ;;  %s1416_s5 = inlined_call_operand.hbm [shape: f32[8,32], index: 5, kind: output, shape index: {1}]   ;;  %s1417_s6 = inlined_call_operand.hbm [shape: f32[8,32], index: 6, kind: output, shape index: {2}]  }
   0x1   :  { %v981_v0 = vld [vmem:[%s1412_s1] sm:$0xff]   ;;  %906 = vmatprep.subr.bf16.mxu1 %v1123_v1  ;;  %v983_v3 = vld [vmem:[%s1412_s1 + $0x8] sm:$0xff]   ;;  %910 = vmatprep.mubr.msk.bf16.mxu1 %vm1124_vm1, %v1123_v1 }
   0x2   :  { %v1176_v2 = vld [vmem:[%s1413_s2] sm:$0xff]   ;;  %894 = vmatprep.subr.bf16.mxu0 %v981_v0  ;;  %v1185_v4 = vld [vmem:[%s1413_s2 + $0x8] sm:$0xff]  }
   0x3   :  { %895 = vmatpush3.bf16.msra.mxu0 %v981_v0  ;;  %907 = vmatpush3.bf16.msra.mxu1 %v1176_v2  ;;  %v985_v5 = vld [vmem:[%s1411_s0] sm:$0xff]   ;;  %v986_v6 = vld [vmem:[%s1411_s0 + $0x8] sm:$0xff]  }
   0x4   :  { %896 = vmatprep.subr.bf16.mxu0 %v983_v3  ;;  %908 = vmatprep.subr.bf16.mxu1 %v1123_v1 }
   0x5   :  { %898 = vmatprep.mubr.msk.bf16.mxu0 %vm74_vm0, %v985_v5 }
   0x7   :  { %897 = vmatpush3.bf16.msra.mxu0 %v983_v3  ;;  %909 = vmatpush3.bf16.msra.mxu1 %v1185_v4 }
   0x8   :  { %13 = vsyncpa [#allocation5], 0  ;;  %914 = vmatprep.subr.bf16.mxu1 %v1123_v1  ;;  %922 = vmatprep.subr.bf16.mxu0 %v1123_v1  ;;  %v1125_v7 = vmov 0   ;;  %v1214_v8 = vld [vmem:[%s1414_s3] ss:$0 sm:$0xff]  ;;  %s1126_s9 = smov 64  }
   0x9   :  { %s1127_s3 = smov 32   ;;  %v987_v50 = vld [vmem:[%s1411_s0 + $0x10] sm:$0xff]   ;;  %v988_v51 = vld [vmem:[%s1411_s0 + $0x18] sm:$0xff]   ;;  %s1128_s0 = smov 96  }
   0xa   :  { %899 = vmatmul.mubr.msk.bf16.vlgmr.msra.gmra.mrb[0].mxu0 %vm74_vm0, %v986_v6  ;;  %911 = vmatmul.mubr.bf16.vlgmr.msra.gmra.mrb[0].mxu1 %v1125_v7  ;;  %s1129_s14 = smov [#allocation4]   ;;  %s1130_s16 = smov [#allocation2]  }
   0xb   :  { %915 = vmatpush3.bf16.msra.mxu1 %v1176_v2  ;;  %918 = vmatprep.mubr.msk.bf16.mxu1 %vm1124_vm1, %v1123_v1  ;;  %s811_s15 = sshll.u32 %s1129_s14, 4  ;;  %s798_s17 = sshll.u32 %s1130_s16, 4  ;;  %s812_s15 = int_to_ptr.vmem [resolvable:$true] %s811_s15  ;;  %s1358_s17 = int_to_ptr.vmem [resolvable:$true] %s798_s17 }
   0xc   :  { %916 = vmatprep.subr.bf16.mxu1 %v1123_v1  ;;  %923 = vmatpush3.bf16.msra.mxu0 %v1176_v2  ;;  %s1131_s18 = smov [#allocation6]   ;;  %s1053_s20 = scalar_lea.vmem %s812_s15, 128 }
   0xd   :  { %924 = vmatprep.subr.bf16.mxu0 %v1123_v1  ;;  %902 = vmatprep.mubr.msk.bf16.mxu0 %vm74_vm0, %v987_v50  ;;  %s821_s19 = sshll.u32 %s1131_s18, 4  ;;  %p1054_p0 = scmp.ne.s32.totalorder %s812_s15, %s1053_s20  ;;  %s1362_s19 = int_to_ptr.vmem [resolvable:$true] %s821_s19 }
   0xe   :  { %p1058_p1 = scmp.lt.s32.totalorder %s812_s15, %s812_s15  ;;  %p1059_p2 = scmp.lt.s32.totalorder %s1053_s20, %s1053_s20 }
   0xf   :  { %917 = vmatpush3.bf16.msra.mxu1 %v1185_v4 }
  0x10   :  { %925 = vmatpush3.bf16.msra.mxu0 %v1185_v4  ;;  %930 = vmatprep.subr.bf16.mxu1 %v1123_v1  ;;  %p1060_p3 = por %p1059_p2, %p1058_p1 }
  0x11   :  { %938 = vmatprep.subr.bf16.mxu0 %v1123_v1 }
  0x12   :  { %903 = vmatmul.mubr.msk.bf16.gmra.mrb[4].mxu0 %vm74_vm0, %v988_v51  ;;  %p1061_p4 = pnand %p1060_p3, %p1054_p0 }
  0x13   :  { %926 = vmatprep.mubr.msk.bf16.mxu0 %vm1124_vm1, %v1123_v1 }
  0xdd   :  { %v1216_v9 = vpop.f32.mrb[0].mxu0  ;;  %v205_v10 = vpop.f32.mrb[0].mxu1 }
  0xde   :  { %v121_v11 = vpop.f32.mrb[1].mxu0  ;;  %v912_v12 = vpop.f32.mrb[1].mxu1  ;;  %v130_v61 = vadd.f32 %v1216_v9, %v1214_v8 }
  0xdf   :  { %v122_v13 = vadd.f32 %v1214_v8, %v121_v11  ;;  %v1219_v14 = vpop.f32.mrb[2].mxu0  ;;  %v208_v15 = vpop.f32.mrb[2].mxu1 }
  0xe0   :  { %v124_v16 = vpop.f32.mrb[3].mxu0  ;;  %v913_v17 = vpop.f32.mrb[3].mxu1 }
  0xe1   :  { %v211_v18 = vadd.f32 %v205_v10, %v122_v13  ;;  %v125_v34 = vadd.f32 %v1214_v8, %v124_v16 }
  0xe3   :  { %989 = vtanh.f32 %v211_v18  ;;  %v849_v20 = vmul.f32 -1.442695, %v211_v18 }
  0xe5   :  { %991 = vpow2.f32 %v849_v20  ;;  %v1255_v56 = vpop.f32.mrb[4].mxu0 }
  0xe6   :  { %v1257_v57 = vpop.f32.mrb[5].mxu0 }
  0xe7   :  { %v1259_v58 = vpop.f32.mrb[6].mxu0 }
  0xe8   :  { %v1261_v59 = vpop.f32.mrb[7].mxu0 }
  0xed   :  { %v990_v19 = vpop.eup %989 }
  0xee   :  { %221 = vrot.lane.b32.xlu0 %v990_v19, %s1126_s9 }
  0xef   :  { %v992_v21 = vpop.eup %991 }
  0xf0   :  { %v215_v22 = vadd.f32 1.0, %v992_v21 }
  0xf2   :  { %993 = vrcp.f32 %v215_v22 }
  0xfc   :  { %v994_v23 = vpop.eup %993 }
  0xfd   :  { %v219_v26 = vmul.f32 0.0, %v994_v23 }
 0x160   :  { %v222_v24 = vpop.permute.xlu0 %221 }
 0x161   :  { %v224_v25 = vmul.f32 %v994_v23, %v222_v24 }
 0x163   :  { %226 = vrot.lane.b32.xlu0 %v224_v25, %s1127_s3 }
 0x1d5   :  { %v227_v27 = vpop.permute.xlu0 %226 }
 0x1d6   :  { %v229_v28 = vadd.f32 %v227_v27, %v219_v26 }
 0x1d8   :  { %995 = vtanh.f32 %v229_v28 }
 0x1e2   :  { %v996_v29 = vpop.eup %995 }
 0x1e3   :  { %232 = vrot.lane.b32.xlu1 %v996_v29, %s1126_s9 }
 0x255   :  { %v233_v30 = vpop.permute.xlu1 %232 }
 0x256   :  { %v1224_v31 = vmul.f32 %v994_v23, %v233_v30  ;;  %v133_v23 = vadd.f32 %v1219_v14, %v1214_v8 }
 0x258   :  { %v241_v32 = vpack.c.bf16 %v1224_v31, %v1224_v31 }
 0x25a   :  { %243 = vrot.lane.b32.xlu1 %v241_v32, %s1127_s3 }
 0x2cc   :  { %v244_v33 = vpop.permute.xlu1 %243 }
 0x2cd   :  { %919 = vmatmul.mubr.msk.bf16.vlgmr.msra.gmra.mrb[4].mxu1 %vm74_vm0, %v244_v33 }
 0x2ce   :  { %931 = vmatpush3.bf16.msra.mxu1 %v1176_v2  ;;  %934 = vmatprep.mubr.msk.bf16.mxu1 %vm1124_vm1, %v1123_v1 }
 0x2cf   :  { %932 = vmatprep.subr.bf16.mxu1 %v1123_v1 }
 0x2d2   :  { %933 = vmatpush3.bf16.msra.mxu1 %v1185_v4 }
 0x2d3   :  { %946 = vmatprep.subr.bf16.mxu1 %v1123_v1 }
 0x3a0   :  { %v282_v35 = vpop.f32.mrb[4].mxu1 }
 0x3a1   :  { %v288_v36 = vadd.f32 %v282_v35, %v125_v34  ;;  %v920_v37 = vpop.f32.mrb[5].mxu1 }
 0x3a2   :  { %v285_v38 = vpop.f32.mrb[6].mxu1 }
 0x3a3   :  { %997 = vtanh.f32 %v288_v36  ;;  %v921_v39 = vpop.f32.mrb[7].mxu1  ;;  %v851_v41 = vmul.f32 -1.442695, %v288_v36 }
 0x3a5   :  { %999 = vpow2.f32 %v851_v41 }
 0x3ad   :  { %v998_v40 = vpop.eup %997 }
 0x3ae   :  { %298 = vrot.lane.b32.xlu0 %v998_v40, %s1126_s9 }
 0x3af   :  { %v1000_v42 = vpop.eup %999 }
 0x3b0   :  { %v292_v43 = vadd.f32 1.0, %v1000_v42 }
 0x3b2   :  { %1001 = vrcp.f32 %v292_v43 }
 0x3bc   :  { %v1002_v44 = vpop.eup %1001 }
 0x3bd   :  { %v296_v47 = vmul.f32 %v1002_v44, %v229_v28 }
 0x420   :  { %v299_v45 = vpop.permute.xlu0 %298 }
 0x421   :  { %v301_v46 = vmul.f32 %v1002_v44, %v299_v45 }
 0x423   :  { %303 = vrot.lane.b32.xlu1 %v301_v46, %s1127_s3 }
 0x495   :  { %v304_v48 = vpop.permute.xlu1 %303 }
 0x496   :  { %v306_v49 = vadd.f32 %v304_v48, %v296_v47 }
 0x498   :  { %1003 = vtanh.f32 %v306_v49 }
 0x4a2   :  { %v1004_v52 = vpop.eup %1003 }
 0x4a3   :  { %309 = vrot.lane.b32.xlu0 %v1004_v52, %s1126_s9 }
 0x515   :  { %v310_v53 = vpop.permute.xlu0 %309 }
 0x516   :  { %v1250_v54 = vmul.f32 %v1002_v44, %v310_v53  ;;  %v138_v44 = vadd.f32 %v1214_v8, %v1257_v57 }
 0x518   :  { %v319_v55 = vpack.c.bf16 %v1250_v54, %v1250_v54 }
 0x51a   :  { %321 = vrot.lane.b32.xlu1 %v319_v55, %s1127_s3 }
 0x58c   :  { %v322_v60 = vpop.permute.xlu1 %321 }
 0x58d   :  { %927 = vmatmul.mubr.msk.bf16.vlgmr.msra.gmra.mrb[8].mxu0 %vm74_vm0, %v322_v60 }
 0x58e   :  { %939 = vmatpush3.bf16.msra.mxu0 %v1176_v2  ;;  %942 = vmatprep.mubr.msk.bf16.mxu0 %vm1124_vm1, %v1123_v1 }
 0x58f   :  { %940 = vmatprep.subr.bf16.mxu0 %v1123_v1 }
 0x592   :  { %941 = vmatpush3.bf16.msra.mxu0 %v1185_v4 }
 0x593   :  { %954 = vmatprep.subr.bf16.mxu0 %v1123_v1 }
 0x660   :  { %v360_v62 = vpop.f32.mrb[8].mxu0 }
 0x661   :  { %v366_v63 = vadd.f32 %v360_v62, %v130_v61  ;;  %v928_v0 = vpop.f32.mrb[9].mxu0 }
 0x662   :  { %v363_v3 = vpop.f32.mrb[10].mxu0 }
 0x663   :  { %1005 = vtanh.f32 %v366_v63  ;;  %v929_v5 = vpop.f32.mrb[11].mxu0  ;;  %v853_v7 = vmul.f32 -1.442695, %v366_v63 }
 0x665   :  { %1007 = vpow2.f32 %v853_v7 }
 0x66d   :  { %v1006_v6 = vpop.eup %1005 }
 0x66e   :  { %376 = vrot.lane.b32.xlu0 %v1006_v6, %s1126_s9 }
 0x66f   :  { %v1008_v10 = vpop.eup %1007 }
 0x670   :  { %v370_v11 = vadd.f32 1.0, %v1008_v10  ;;  %v141_v10 = vadd.f32 %v1214_v8, %v1261_v59 }
 0x672   :  { %1009 = vrcp.f32 %v370_v11 }
 0x67c   :  { %v1010_v12 = vpop.eup %1009 }
 0x67d   :  { %v374_v9 = vmul.f32 %v1010_v12, %v306_v49 }
 0x6e0   :  { %v377_v13 = vpop.permute.xlu0 %376 }
 0x6e1   :  { %v379_v15 = vmul.f32 %v1010_v12, %v377_v13 }
 0x6e3   :  { %381 = vrot.lane.b32.xlu1 %v379_v15, %s1127_s3 }
 0x755   :  { %v382_v16 = vpop.permute.xlu1 %381 }
 0x756   :  { %v384_v17 = vadd.f32 %v382_v16, %v374_v9 }
 0x758   :  { %1011 = vtanh.f32 %v384_v17 }
 0x762   :  { %v1012_v18 = vpop.eup %1011 }
 0x763   :  { %387 = vrot.lane.b32.xlu0 %v1012_v18, %s1126_s9 }
 0x7d5   :  { %v388_v19 = vpop.permute.xlu0 %387 }
 0x7d6   :  { %v1275_v20 = vmul.f32 %v1010_v12, %v388_v19 }
 0x7d8   :  { %v397_v21 = vpack.c.bf16 %v1275_v20, %v1275_v20 }
 0x7da   :  { %399 = vrot.lane.b32.xlu1 %v397_v21, %s1127_s3 }
 0x84c   :  { %v400_v22 = vpop.permute.xlu1 %399 }
 0x84d   :  { %935 = vmatmul.mubr.msk.bf16.vlgmr.msra.gmra.mrb[8].mxu1 %vm74_vm0, %v400_v22 }
 0x84e   :  { %947 = vmatpush3.bf16.msra.mxu1 %v1176_v2  ;;  %950 = vmatprep.mubr.msk.bf16.mxu1 %vm1124_vm1, %v1123_v1 }
 0x84f   :  { %948 = vmatprep.subr.bf16.mxu1 %v1123_v1 }
 0x852   :  { %949 = vmatpush3.bf16.msra.mxu1 %v1185_v4 }
 0x853   :  { %962 = vmatprep.subr.bf16.mxu1 %v1123_v1 }
 0x920   :  { %v438_v24 = vpop.f32.mrb[8].mxu1 }
 0x921   :  { %v444_v25 = vadd.f32 %v438_v24, %v133_v23  ;;  %v936_v26 = vpop.f32.mrb[9].mxu1 }
 0x922   :  { %v441_v27 = vpop.f32.mrb[10].mxu1 }
 0x923   :  { %1013 = vtanh.f32 %v444_v25  ;;  %v937_v28 = vpop.f32.mrb[11].mxu1  ;;  %v855_v30 = vmul.f32 -1.442695, %v444_v25 }
 0x924   :  { %v146_v28 = vadd.f32 %v1255_v56, %v1214_v8 }
 0x925   :  { %1015 = vpow2.f32 %v855_v30 }
 0x92d   :  { %v1014_v29 = vpop.eup %1013 }
 0x92e   :  { %454 = vrot.lane.b32.xlu0 %v1014_v29, %s1126_s9 }
 0x92f   :  { %v1016_v32 = vpop.eup %1015 }
 0x930   :  { %v448_v33 = vadd.f32 1.0, %v1016_v32 }
 0x932   :  { %1017 = vrcp.f32 %v448_v33 }
 0x93c   :  { %v1018_v34 = vpop.eup %1017 }
 0x93d   :  { %v452_v14 = vmul.f32 %v1018_v34, %v384_v17 }
 0x9a0   :  { %v455_v35 = vpop.permute.xlu0 %454 }
 0x9a1   :  { %v457_v36 = vmul.f32 %v1018_v34, %v455_v35 }
 0x9a3   :  { %459 = vrot.lane.b32.xlu1 %v457_v36, %s1127_s3 }
 0xa15   :  { %v460_v37 = vpop.permute.xlu1 %459 }
 0xa16   :  { %v462_v38 = vadd.f32 %v460_v37, %v452_v14 }
 0xa18   :  { %1019 = vtanh.f32 %v462_v38 }
 0xa22   :  { %v1020_v39 = vpop.eup %1019 }
 0xa23   :  { %465 = vrot.lane.b32.xlu0 %v1020_v39, %s1126_s9 }
 0xa95   :  { %v466_v40 = vpop.permute.xlu0 %465 }
 0xa96   :  { %v1292_v41 = vmul.f32 %v1018_v34, %v466_v40 }
 0xa98   :  { %v475_v42 = vpack.c.bf16 %v1292_v41, %v1292_v41 }
 0xa9a   :  { %477 = vrot.lane.b32.xlu1 %v475_v42, %s1127_s3 }
 0xb0c   :  { %v478_v43 = vpop.permute.xlu1 %477 }
 0xb0d   :  { %943 = vmatmul.mubr.msk.bf16.vlgmr.msra.gmra.mrb[12].mxu0 %vm74_vm0, %v478_v43 }
 0xb0e   :  { %955 = vmatpush3.bf16.msra.mxu0 %v1176_v2  ;;  %958 = vmatprep.mubr.msk.bf16.mxu0 %vm1124_vm1, %v1123_v1 }
 0xb0f   :  { %956 = vmatprep.subr.bf16.mxu0 %v1123_v1 }
 0xb12   :  { %957 = vmatpush3.bf16.msra.mxu0 %v1185_v4 }
 0xbe0   :  { %v516_v45 = vpop.f32.mrb[12].mxu0 }
 0xbe1   :  { %v522_v46 = vadd.f32 %v516_v45, %v138_v44  ;;  %v944_v47 = vpop.f32.mrb[13].mxu0 }
 0xbe2   :  { %v519_v48 = vpop.f32.mrb[14].mxu0 }
 0xbe3   :  { %1021 = vtanh.f32 %v522_v46  ;;  %v945_v49 = vpop.f32.mrb[15].mxu0  ;;  %v857_v51 = vmul.f32 -1.442695, %v522_v46 }
 0xbe4   :  { %v149_v49 = vadd.f32 %v1259_v58, %v1214_v8 }
 0xbe5   :  { %1023 = vpow2.f32 %v857_v51 }
 0xbed   :  { %v1022_v50 = vpop.eup %1021 }
 0xbee   :  { %532 = vrot.lane.b32.xlu0 %v1022_v50, %s1126_s9 }
 0xbef   :  { %v1024_v52 = vpop.eup %1023 }
 0xbf0   :  { %v526_v53 = vadd.f32 1.0, %v1024_v52 }
 0xbf2   :  { %1025 = vrcp.f32 %v526_v53 }
 0xbfc   :  { %v1026_v55 = vpop.eup %1025 }
 0xbfd   :  { %v530_v57 = vmul.f32 %v1026_v55, %v462_v38 }
 0xc60   :  { %v533_v60 = vpop.permute.xlu0 %532 }
 0xc61   :  { %v535_v61 = vmul.f32 %v1026_v55, %v533_v60 }
 0xc63   :  { %537 = vrot.lane.b32.xlu1 %v535_v61, %s1127_s3 }
 0xcd5   :  { %v538_v62 = vpop.permute.xlu1 %537 }
 0xcd6   :  { %v540_v63 = vadd.f32 %v538_v62, %v530_v57 }
 0xcd8   :  { %1027 = vtanh.f32 %v540_v63 }
 0xce2   :  { %v1028_v0 = vpop.eup %1027 }
 0xce3   :  { %543 = vrot.lane.b32.xlu0 %v1028_v0, %s1126_s9 }
 0xd55   :  { %v544_v3 = vpop.permute.xlu0 %543 }
 0xd56   :  { %v1308_v5 = vmul.f32 %v1026_v55, %v544_v3 }
 0xd58   :  { %v553_v6 = vpack.c.bf16 %v1308_v5, %v1308_v5 }
 0xd5a   :  { %555 = vrot.lane.b32.xlu1 %v553_v6, %s1127_s3 }
 0xdcc   :  { %v556_v7 = vpop.permute.xlu1 %555 }
 0xdcd   :  { %951 = vmatmul.mubr.msk.bf16.vlgmr.msra.gmra.mrb[12].mxu1 %vm74_vm0, %v556_v7 }
 0xdce   :  { %963 = vmatpush3.bf16.msra.mxu1 %v1176_v2  ;;  %966 = vmatprep.mubr.msk.bf16.mxu1 %vm1124_vm1, %v1123_v1 }
 0xdcf   :  { %964 = vmatprep.subr.bf16.mxu1 %v1123_v1 }
 0xdd2   :  { %965 = vmatpush3.bf16.msra.mxu1 %v1185_v4 }
 0xea0   :  { %v594_v11 = vpop.f32.mrb[12].mxu1 }
 0xea1   :  { %v600_v12 = vadd.f32 %v594_v11, %v141_v10  ;;  %v952_v13 = vpop.f32.mrb[13].mxu1 }
 0xea2   :  { %v597_v15 = vpop.f32.mrb[14].mxu1 }
 0xea3   :  { %1029 = vtanh.f32 %v600_v12  ;;  %v953_v9 = vpop.f32.mrb[15].mxu1  ;;  %v859_v2 = vmul.f32 -1.442695, %v600_v12 }
 0xea5   :  { %1031 = vpow2.f32 %v859_v2 }
 0xead   :  { %v1030_v16 = vpop.eup %1029 }
 0xeae   :  { %610 = vrot.lane.b32.xlu0 %v1030_v16, %s1126_s9 }
 0xeaf   :  { %v1032_v17 = vpop.eup %1031 }
 0xeb0   :  { %v604_v18 = vadd.f32 1.0, %v1032_v17 }
 0xeb2   :  { %1033 = vrcp.f32 %v604_v18 }
 0xebc   :  { %v1034_v1 = vpop.eup %1033 }
 0xebd   :  { %v608_v59 = vmul.f32 %v1034_v1, %v540_v63 }
 0xf20   :  { %v611_v19 = vpop.permute.xlu0 %610 }
 0xf21   :  { %v613_v4 = vmul.f32 %v1034_v1, %v611_v19 }
 0xf23   :  { %615 = vrot.lane.b32.xlu1 %v613_v4, %s1127_s3 }
 0xf95   :  { %v616_v21 = vpop.permute.xlu1 %615 }
 0xf96   :  { %v618_v22 = vadd.f32 %v616_v21, %v608_v59 }
 0xf98   :  { %1035 = vtanh.f32 %v618_v22 }
 0xfa2   :  { %v1036_v23 = vpop.eup %1035 }
 0xfa3   :  { %621 = vrot.lane.b32.xlu0 %v1036_v23, %s1126_s9 }
0x1015   :  { %v622_v24 = vpop.permute.xlu0 %621 }
0x1016   :  { %v624_v25 = vmul.f32 %v1034_v1, %v622_v24 }
0x1018   :  { %v631_v26 = vpack.c.bf16 %v624_v25, %v624_v25 }
0x101a   :  { %633 = vrot.lane.b32.xlu1 %v631_v26, %s1127_s3 }
0x108c   :  { %v634_v27 = vpop.permute.xlu1 %633 }
0x108d   :  { %959 = vmatmul.mubr.msk.bf16.vlgmr.msra.gmra.mrb[16].mxu0 %vm74_vm0, %v634_v27 }
0x1160   :  { %v672_v29 = vpop.f32.mrb[16].mxu0 }
0x1161   :  { %v678_v30 = vadd.f32 %v672_v29, %v146_v28  ;;  %v960_v32 = vpop.f32.mrb[17].mxu0 }
0x1162   :  { %v675_v33 = vpop.f32.mrb[18].mxu0 }
0x1163   :  { %1037 = vtanh.f32 %v678_v30  ;;  %v961_v34 = vpop.f32.mrb[19].mxu0  ;;  %v861_v36 = vmul.f32 -1.442695, %v678_v30 }
0x1165   :  { %1039 = vpow2.f32 %v861_v36 }
0x116d   :  { %v1038_v35 = vpop.eup %1037 }
0x116e   :  { %688 = vrot.lane.b32.xlu0 %v1038_v35, %s1126_s9 }
0x116f   :  { %v1040_v14 = vpop.eup %1039 }
0x1170   :  { %v682_v37 = vadd.f32 1.0, %v1040_v14 }
0x1172   :  { %1041 = vrcp.f32 %v682_v37 }
0x117c   :  { %v1042_v38 = vpop.eup %1041 }
0x117d   :  { %v686_v56 = vmul.f32 %v1042_v38, %v618_v22 }
0x11e0   :  { %v689_v39 = vpop.permute.xlu0 %688 }
0x11e1   :  { %v691_v40 = vmul.f32 %v1042_v38, %v689_v39 }
0x11e3   :  { %693 = vrot.lane.b32.xlu1 %v691_v40, %s1127_s3 }
0x1255   :  { %v694_v42 = vpop.permute.xlu1 %693 }
0x1256   :  { %v696_v43 = vadd.f32 %v694_v42, %v686_v56 }
0x1258   :  { %1043 = vtanh.f32 %v696_v43 }
0x1262   :  { %v1044_v44 = vpop.eup %1043 }
0x1263   :  { %699 = vrot.lane.b32.xlu0 %v1044_v44, %s1126_s9 }
0x12d5   :  { %v700_v45 = vpop.permute.xlu0 %699 }
0x12d6   :  { %v702_v46 = vmul.f32 %v1042_v38, %v700_v45 }
0x12d8   :  { %v709_v47 = vpack.c.bf16 %v702_v46, %v702_v46 }
0x12da   :  { %711 = vrot.lane.b32.xlu1 %v709_v47, %s1127_s3 }
0x134c   :  { %v712_v48 = vpop.permute.xlu1 %711 }
0x134d   :  { %967 = vmatmul.mubr.msk.bf16.vlgmr.msra.gmra.mrb[16].mxu1 %vm74_vm0, %v712_v48 }
0x1420   :  { %v750_v50 = vpop.f32.mrb[16].mxu1 }
0x1421   :  { %v756_v51 = vadd.f32 %v750_v50, %v149_v49  ;;  %v968_v52 = vpop.f32.mrb[17].mxu1 }
0x1422   :  { %v753_v53 = vpop.f32.mrb[18].mxu1 }
0x1423   :  { %1045 = vtanh.f32 %v756_v51  ;;  %v969_v55 = vpop.f32.mrb[19].mxu1  ;;  %v863_v61 = vmul.f32 -1.442695, %v756_v51 }
0x1425   :  { %1047 = vpow2.f32 %v863_v61 }
0x142d   :  { %v1046_v60 = vpop.eup %1045 }
0x142e   :  { %766 = vrot.lane.b32.xlu0 %v1046_v60, %s1126_s9 }
0x142f   :  { %v1048_v57 = vpop.eup %1047 }
0x1430   :  { %v760_v62 = vadd.f32 1.0, %v1048_v57 }
0x1432   :  { %1049 = vrcp.f32 %v760_v62 }
0x143c   :  { %v1050_v63 = vpop.eup %1049 }
0x143d   :  { %v764_v8 = vmul.f32 %v1050_v63, %v696_v43 }
0x14a0   :  { %v767_v0 = vpop.permute.xlu0 %766 }
0x14a1   :  { %v769_v3 = vmul.f32 %v1050_v63, %v767_v0 }
0x14a3   :  { %771 = vrot.lane.b32.xlu1 %v769_v3, %s1127_s3 }
0x14a7   :  { %314 = vrot.lane.b32.xlu1 %v1250_v54, %s1127_s3 }
0x14ab   :  { %470 = vrot.lane.b32.xlu1 %v1292_v41, %s1127_s3 }
0x14af   :  { %626 = vrot.lane.b32.xlu1 %v624_v25, %s1127_s3 }
0x1515   :  { %v772_v58 = vpop.permute.xlu1 %771 }
0x1516   :  { %v774_v6 = vadd.f32 %v772_v58, %v764_v8 }
0x1518   :  { %1051 = vtanh.f32 %v774_v6 }
0x1519   :  { %v315_v7 = vpop.permute.xlu1 %314 }
0x151a   :  { %318 = vst.msk [vmem:[#allocation2 + $0x8] sm:$0xff] %vm74_vm0, %v315_v7 }
0x151d   :  { %v471_v10 = vpop.permute.xlu1 %470 }
0x151e   :  { %474 = vst.msk [vmem:[#allocation2 + $0x18] sm:$0xff] %vm74_vm0, %v471_v10 }
0x1521   :  { %v627_v11 = vpop.permute.xlu1 %626 }
0x1522   :  { %v1052_v12 = vpop.eup %1051  ;;  %630 = vst.msk [vmem:[#allocation2 + $0x28] sm:$0xff] %vm74_vm0, %v627_v11 }
0x1523   :  { %777 = vrot.lane.b32.xlu0 %v1052_v12, %s1126_s9 }
0x1527   :  { %237 = vrot.lane.b32.xlu0 %v1224_v31, %s1127_s3 }
0x152b   :  { %392 = vrot.lane.b32.xlu0 %v1275_v20, %s1127_s3 }
0x152f   :  { %548 = vrot.lane.b32.xlu0 %v1308_v5, %s1127_s3 }
0x1533   :  { %704 = vrot.lane.b32.xlu0 %v702_v46, %s1127_s3 }
0x1595   :  { %v778_v54 = vpop.permute.xlu0 %777 }
0x1596   :  { %v780_v41 = vmul.f32 %v1050_v63, %v778_v54 }
0x1598   :  { %782 = vrot.lane.b32.xlu1 %v780_v41, %s1127_s3 }
0x1599   :  { %v238_v13 = vpop.permute.xlu0 %237 }
0x159a   :  { %240 = vst.msk [vmem:[#allocation2] sm:$0xff] %vm74_vm0, %v238_v13 }
0x159c   :  { %789 = vrot.lane.b32.xlu1 %v774_v6, %s1128_s0 }
0x159d   :  { %v393_v15 = vpop.permute.xlu0 %392 }
0x159e   :  { %396 = vst.msk [vmem:[#allocation2 + $0x10] sm:$0xff] %vm74_vm0, %v393_v15 }
0x15a1   :  { %v549_v31 = vpop.permute.xlu0 %548 }
0x15a2   :  { %552 = vst.msk [vmem:[#allocation2 + $0x20] sm:$0xff] %vm74_vm0, %v549_v31 }
0x15a5   :  { %v705_v20 = vpop.permute.xlu0 %704 }
0x15a6   :  { %708 = vst.msk [vmem:[#allocation2 + $0x30] sm:$0xff] %vm74_vm0, %v705_v20 }
0x160a   :  { %v783_v5 = vpop.permute.xlu1 %782 }
0x160b   :  { %786 = vst.msk [vmem:[#allocation2 + $0x38] sm:$0xff] %vm74_vm0, %v783_v5  ;;  %787 = vst.msk [vmem:[#allocation4] sm:$0xff] %vm74_vm0, %v783_v5 }
0x160c   :  { %1064 = shalt.err (!%p1061_p4)
}
0x160d   :  { %s1065_s23 = scalar_lea.hbm %s1416_s5, 128 }
0x160e   :  { %p1066_p5 = scmp.ne.s32.totalorder %s1416_s5, %s1065_s23  ;;  %p1069_p6 = scmp.lt.u32.totalorder %s1065_s23, %s1416_s5 }
0x1610   :  { %p1071_p7 = pnand %p1069_p6, %p1066_p5 }
0x1612   :  { %1074 = shalt.err (!%p1071_p7)
}
0x1613   :  { %814 = dma.vmem_to_hbm [thread:$0]  %s812_s15, 128, %s1416_s5, [#allocation5]  }
0x1614   :  { %s1075_s30 = scalar_lea.vmem %s1358_s17, 1024  ;;  %p1080_p9 = scmp.lt.s32.totalorder %s1358_s17, %s1358_s17 }
0x1615   :  { %p1076_p8 = scmp.ne.s32.totalorder %s1358_s17, %s1075_s30  ;;  %p1081_p10 = scmp.lt.s32.totalorder %s1075_s30, %s1075_s30 }
0x1617   :  { %p1082_p11 = por %p1081_p10, %p1080_p9 }
0x1619   :  { %p1083_p12 = pnand %p1082_p11, %p1076_p8 }
0x161b   :  { %1086 = shalt.err (!%p1083_p12)
}
0x161c   :  { %s1087_s2 = scalar_lea.hbm %s1415_s4, 1024 }
0x161d   :  { %p1088_p13 = scmp.ne.s32.totalorder %s1415_s4, %s1087_s2  ;;  %p1091_p0 = scmp.lt.u32.totalorder %s1087_s2, %s1415_s4 }
0x161f   :  { %p1093_p1 = pnand %p1091_p0, %p1088_p13 }
0x1621   :  { %1096 = shalt.err (!%p1093_p1)
}
0x1622   :  { %s1132_s5 = smov 128   ;;  %s1133_s11 = smov 8   ;;  %v790_v9 = vpop.permute.xlu1 %789 }
0x1623   :  { %804 = dma.vmem_to_hbm [thread:$0]  %s1358_s17, 1024, %s1415_s4, [#allocation3], %s1132_s5, %s1132_s5, %s1133_s11   ;;  %792 = vst.msk [vmem:[#allocation6] sm:$0xff] %vm74_vm0, %v790_v9 }
0x1624   :  { %s1097_s0 = scalar_lea.vmem %s1362_s19, 128  ;;  %p1102_p3 = scmp.lt.s32.totalorder %s1362_s19, %s1362_s19 }
0x1625   :  { %p1098_p2 = scmp.ne.s32.totalorder %s1362_s19, %s1097_s0  ;;  %p1103_p4 = scmp.lt.s32.totalorder %s1097_s0, %s1097_s0 }
0x1627   :  { %p1104_p5 = por %p1103_p4, %p1102_p3 }
0x1629   :  { %p1105_p6 = pnand %p1104_p5, %p1098_p2 }
0x162b   :  { %1108 = shalt.err (!%p1105_p6)
}
0x162c   :  { %s1109_s16 = scalar_lea.hbm %s1417_s6, 128 }
0x162d   :  { %p1110_p7 = scmp.ne.s32.totalorder %s1417_s6, %s1109_s16  ;;  %p1113_p8 = scmp.lt.u32.totalorder %s1109_s16, %s1417_s6 }
0x162f   :  { %p1115_p9 = pnand %p1113_p8, %p1110_p7 }
0x1631   :  { %1118 = shalt.err (!%p1115_p9)
}
0x1632   :  { %824 = dma.vmem_to_hbm [thread:$0]  %s1362_s19, 128, %s1417_s6, [#allocation5]  }
0x1633   :  { %1119 = dma.done.wait [#allocation3], 1024  }
0x1634   :  { %1120 = vsyncadd [#allocation3], 4294966272 }
0x1635   :  { %1121 = dma.done.wait [#allocation5], 256  }
0x1636   :  { %1122 = vsyncadd [#allocation5], 4294967040 }
0x1637   :  { %834 = vsyncpa [#allocation3], 1 }
0x1638   :  { %835 = vsyncpa [#allocation5], 1 }

</bundles_post_ra>
